<compile_context>
chip_gen: v5e
topology: v5e:2x2
jax: 0.10.0
libtpu: 0.0.40
codegen_flags: <defaults>
</compile_context>

<pallas_src>
import math
from functools import partial

import jax
import jax.numpy as jnp
import numpy as np
from jax.experimental import pallas as pl
from jax.experimental.pallas import tpu as pltpu


def _attention_kernel(x_ref, wqkv_ref, wo_ref, sq_ref, sk_ref, o_ref, scores_ref,
                      *, num_heads, head_dim, dim):
    """One batch row per grid step; all heads fused.

    x_ref     : (1, N, D)  bf16 activations
    wqkv_ref  : (D, 3D)    bf16 fused [Wq | Wk | Wv]   (resident, constant index map)
    wo_ref    : (D, D)     bf16 output projection       (resident)
    sq_ref    : (H, hd)    fp32 q-side scale, attn_scale already folded in (resident)
    sk_ref    : (H, hd)    fp32 k-side scale            (resident)
    o_ref     : (1, N, D)  output block
    scores_ref: (N, D)     bf16 VMEM scratch: concatenated per-head PV results
    """
    x = x_ref[0]                                                          # (N, D) bf16

    # Fused QKV projection for ALL heads: one full-width MXU matmul, fp32 accumulation.
    qkv = jnp.dot(x, wqkv_ref[...], preferred_element_type=jnp.float32)  # (N, 3D) f32
    q = qkv[:, :dim]
    k = qkv[:, dim:2 * dim]
    v = qkv[:, 2 * dim:]

    # Per-head attention core, statically unrolled (H is small for ViT).
    for h in range(num_heads):
        sl = slice(h * head_dim, (h + 1) * head_dim)
        qh = q[:, sl]                                                     # (N, hd) f32
        kh = k[:, sl]
        vh = v[:, sl]

        # cosine_norm(t) = t / clamp(||t||_2, 1e-6) == t * rsqrt(max(sum t^2, 1e-12))
        q_inv = jax.lax.rsqrt(jnp.maximum(jnp.sum(qh * qh, axis=-1, keepdims=True), 1e-12))
        k_inv = jax.lax.rsqrt(jnp.maximum(jnp.sum(kh * kh, axis=-1, keepdims=True), 1e-12))
        qh = qh * q_inv * sq_ref[pl.ds(h, 1), :]      # sqrt(head_dim) folded into sq (wrapper)
        kh = kh * k_inv * sk_ref[pl.ds(h, 1), :]

        # logits = q @ k^T without materializing k^T (contract last dims of both operands).
        logits = jax.lax.dot_general(
            qh.astype(jnp.bfloat16), kh.astype(jnp.bfloat16),
            dimension_numbers=(((1,), (1,)), ((), ())),
            preferred_element_type=jnp.float32)                           # (N, N) f32

        # Softmax: keep the row-max subtraction for safety (s_qk is learnable, so logits are
        # not provably bounded); normalization is deferred to after the PV matmul.
        m = jnp.max(logits, axis=-1, keepdims=True)
        p = jnp.exp(logits - m)
        denom = jnp.sum(p, axis=-1, keepdims=True)                        # (N, 1)

        oh = jnp.dot(p.astype(jnp.bfloat16), vh.astype(jnp.bfloat16),
                     preferred_element_type=jnp.float32)                  # (N, hd) f32
        oh = oh * pl.reciprocal(denom, approx=True)                       # EUP; (N,hd) not (N,N)

        scores_ref[:, sl] = oh.astype(scores_ref.dtype)

    # Single full-width output projection: (N, D) @ (D, D), fp32 accumulation.
    o_ref[0] = jnp.dot(scores_ref[...], wo_ref[...],
                       preferred_element_type=jnp.float32).astype(o_ref.dtype)


def attention_forward(x, wq, wk, wv, wo, s_qk_eff, *, num_heads):
    """x: (B, N, D). w*: (D, D) applied as x @ W (== PyTorch x @ weight.T). s_qk_eff: (H, hd)."""
    B, N, D = x.shape
    head_dim = D // num_heads
    attn_scale = float(head_dim) ** 0.5
    out_dtype = x.dtype

    # ---- weight plumbing (outside the kernel, done once) ----
    wqkv = jnp.concatenate([wq, wk, wv], axis=-1).astype(jnp.bfloat16)    # (D, 3D)
    wo_b = wo.astype(jnp.bfloat16)                                        # (D, D)
    # Fold attn_scale into the q-side scale (hoisted out of the kernel's head loop).
    s_q = (s_qk_eff * attn_scale).astype(jnp.float32)                     # (H, hd)
    s_k = s_qk_eff.astype(jnp.float32)                                    # (H, hd)
    x_bf = x.astype(jnp.bfloat16)

    kernel = partial(_attention_kernel, num_heads=num_heads, head_dim=head_dim, dim=D)

    return pl.pallas_call(
        kernel,
        out_shape=jax.ShapeDtypeStruct((B, N, D), out_dtype),
        grid_spec=pltpu.PrefetchScalarGridSpec(
            num_scalar_prefetch=0,
            grid=(B,),
            in_specs=[
                # activations: one batch row per grid step
                pl.BlockSpec((1, N, D), lambda b: (b, 0, 0)),
                # weights / scales: constant index maps -> fetched once, resident in VMEM.
                # TODO(synk): on v7x (64 MiB VMEM) add pipeline_mode=pl.Buffered(1) to these
                # resident specs to drop their second pipeline buffer at large D.
                pl.BlockSpec((D, 3 * D), lambda b: (0, 0)),
                pl.BlockSpec((D, D), lambda b: (0, 0)),
                pl.BlockSpec((num_heads, head_dim), lambda b: (0, 0)),
                pl.BlockSpec((num_heads, head_dim), lambda b: (0, 0)),
            ],
            out_specs=pl.BlockSpec((1, N, D), lambda b: (b, 0, 0)),
            scratch_shapes=[pltpu.VMEM((N, D), jnp.bfloat16)],
        ),
        compiler_params=pltpu.CompilerParams(
            # Batch axis shardable across TensorCores (v7x megacore).
            dimension_semantics=("parallel",),
            # Default scoped-VMEM limit is ample for these block sizes; for large D/N raise
            # vmem_limit_bytes toward 64-100 MiB on v5e/v6e (128 MiB physical) and keep it
            # <= ~48 MiB on v7x (64 MiB physical).
        ),
    )(x_bf, wqkv, wo_b, s_q, s_k)


def reference_forward(x, wq, wk, wv, wo, s_qk_eff, *, num_heads):
    """Pure-JAX fp32 reference mirroring the PyTorch module semantics."""
    B, N, D = x.shape
    hd = D // num_heads
    q = (x @ wq).reshape(B, N, num_heads, hd)
    k = (x @ wk).reshape(B, N, num_heads, hd)
    v = (x @ wv).reshape(B, N, num_heads, hd)

    def cn(t):
        norm = jnp.maximum(jnp.linalg.norm(t, axis=-1, keepdims=True), 1e-6)
        return t / norm

    q = cn(q) * s_qk_eff
    k = cn(k) * s_qk_eff
    q = q.transpose(0, 2, 1, 3)
    k = k.transpose(0, 2, 1, 3)
    v = v.transpose(0, 2, 1, 3)
    logits = jnp.einsum("bhqd,bhkd->bhqk", q, k) * (hd ** 0.5)
    p = jax.nn.softmax(logits, axis=-1)
    scores = jnp.einsum("bhqk,bhkd->bhqd", p, v)
    scores = scores.transpose(0, 2, 1, 3).reshape(B, N, D)
    return scores @ wo


if __name__ == "__main__":
    # Small shapes consistent with the module: batch=2, seq(num_patches)=8, dim=32, heads=4.
    # (These toy blocks are legal -- full-array dims; for real benchmarking use N/D that are
    #  multiples of 128 in the lane dim for unmasked, lane-dense stores.)
    B, N, D = 2, 8, 32
    num_heads = 4
    head_dim = D // num_heads

    key = jax.random.PRNGKey(0)
    kx, kq, kk, kv, ko = jax.random.split(key, 5)

    x = jax.random.normal(kx, (B, N, D), dtype=jnp.float32)

    # nn.Linear(dim, dim, bias=False): weight is (out, in); y = x @ weight.T.
    # We store the transposed weights directly so the kernel computes x @ W.
    def linear_weight_T(k):
        bound = 1.0 / math.sqrt(D)
        w = jax.random.uniform(k, (D, D), jnp.float32, -bound, bound)
        return w.T

    wq = linear_weight_T(kq)
    wk = linear_weight_T(kk)
    wv = linear_weight_T(kv)
    wo = linear_weight_T(ko)

    # Scale module: s = ones(heads, head_dim) * scale, scale = 1/sqrt(dim), init = 1.0,
    # effective = s * (init / scale)  -> all ones here (deterministic).
    scale = 1.0 / math.sqrt(D)
    init = 1.0
    s_param = jnp.ones((num_heads, head_dim), jnp.float32) * scale
    s_qk_eff = s_param * (init / scale)

    out = attention_forward(x, wq, wk, wv, wo, s_qk_eff, num_heads=num_heads)
    out = jax.block_until_ready(out)

    ref = reference_forward(x, wq, wk, wv, wo, s_qk_eff, num_heads=num_heads)
    # bf16 MXU inputs (fp32 accumulation) + approx softmax reciprocal -> compare against the
    # fp32 reference with a bf16-appropriate tolerance.
    assert np.allclose(np.asarray(out), np.asarray(ref), atol=3e-2, rtol=3e-2)

    print("KERNEL_OK")
</pallas_src>

<mosaic_0001>
module attributes {stable_mosaic.version = 11 : i64} {
  func.func @_attention_kernel(%arg0: i32, %arg1: memref<1x8x32xbf16, #tpu.memory_space<vmem>>, %arg2: memref<32x96xbf16, #tpu.memory_space<vmem>>, %arg3: memref<32x32xbf16, #tpu.memory_space<vmem>>, %arg4: memref<4x8xf32, #tpu.memory_space<vmem>>, %arg5: memref<4x8xf32, #tpu.memory_space<vmem>>, %arg6: memref<1x8x32xf32, #tpu.memory_space<vmem>>, %arg7: memref<8x32xbf16, #tpu.memory_space<vmem>>) attributes {dimension_semantics = [#tpu.dimension_semantics<parallel>], iteration_bounds = array<i64: 2>, scalar_prefetch = 0 : i64, scratch_operands = 1 : i64, tpu.core_type = #tpu.core_type<tc>, window_params = [{transform_indices = @transform_0, window_bounds = array<i64: 1, 8, 32>}, {pipeline_mode = #tpu.pipeline_mode<synchronous>, transform_indices = @transform_1, window_bounds = array<i64: 32, 96>}, {pipeline_mode = #tpu.pipeline_mode<synchronous>, transform_indices = @transform_2, window_bounds = array<i64: 32, 32>}, {pipeline_mode = #tpu.pipeline_mode<synchronous>, transform_indices = @transform_3, window_bounds = array<i64: 4, 8>}, {pipeline_mode = #tpu.pipeline_mode<synchronous>, transform_indices = @transform_4, window_bounds = array<i64: 4, 8>}, {transform_indices = @transform_5, window_bounds = array<i64: 1, 8, 32>}]} {
    %c0 = arith.constant 0 : index
    %c0_0 = arith.constant 0 : index
    %c0_1 = arith.constant 0 : index
    %0 = vector.load %arg1[%c0, %c0_0, %c0_1] : memref<1x8x32xbf16, #tpu.memory_space<vmem>>, vector<1x8x32xbf16>
    %1 = vector.shape_cast %0 : vector<1x8x32xbf16> to vector<8x32xbf16>
    %c0_2 = arith.constant 0 : index
    %c0_3 = arith.constant 0 : index
    %2 = vector.load %arg2[%c0_2, %c0_3] : memref<32x96xbf16, #tpu.memory_space<vmem>>, vector<32x96xbf16>
    %cst = arith.constant dense<0.000000e+00> : vector<8x96xf32>
    %3 = tpu.matmul %1, %2, %cst {dimension_numbers = #tpu.dot_dimension_numbers<[1], [0], [0], [1], [0, 0, 1, 1], [], []>} : vector<8x32xbf16>, vector<32x96xbf16>, vector<8x96xf32> -> vector<8x96xf32>
    %4 = vector.extract_strided_slice %3 {offsets = [0, 0], sizes = [8, 32], strides = [1, 1]} : vector<8x96xf32> to vector<8x32xf32>
    %5 = vector.extract_strided_slice %3 {offsets = [0, 32], sizes = [8, 32], strides = [1, 1]} : vector<8x96xf32> to vector<8x32xf32>
    %6 = vector.extract_strided_slice %3 {offsets = [0, 64], sizes = [8, 32], strides = [1, 1]} : vector<8x96xf32> to vector<8x32xf32>
    %7 = vector.extract_strided_slice %4 {offsets = [0, 0], sizes = [8, 8], strides = [1, 1]} : vector<8x32xf32> to vector<8x8xf32>
    %8 = vector.extract_strided_slice %5 {offsets = [0, 0], sizes = [8, 8], strides = [1, 1]} : vector<8x32xf32> to vector<8x8xf32>
    %9 = vector.extract_strided_slice %6 {offsets = [0, 0], sizes = [8, 8], strides = [1, 1]} : vector<8x32xf32> to vector<8x8xf32>
    %10 = arith.mulf %7, %7 : vector<8x8xf32>
    %cst_4 = arith.constant dense<0.000000e+00> : vector<8xf32>
    %11 = vector.multi_reduction <add>, %10, %cst_4 [1] : vector<8x8xf32> to vector<8xf32>
    %12 = vector.shape_cast %11 : vector<8xf32> to vector<8x1xf32>
    %cst_5 = arith.constant 9.99999996E-13 : f32
    %13 = vector.broadcast %cst_5 : f32 to vector<8x1xf32>
    %14 = arith.maximumf %12, %13 : vector<8x1xf32>
    %15 = math.rsqrt %14 : vector<8x1xf32>
    %16 = arith.mulf %8, %8 : vector<8x8xf32>
    %cst_6 = arith.constant dense<0.000000e+00> : vector<8xf32>
    %17 = vector.multi_reduction <add>, %16, %cst_6 [1] : vector<8x8xf32> to vector<8xf32>
    %18 = vector.shape_cast %17 : vector<8xf32> to vector<8x1xf32>
    %cst_7 = arith.constant 9.99999996E-13 : f32
    %19 = vector.broadcast %cst_7 : f32 to vector<8x1xf32>
    %20 = arith.maximumf %18, %19 : vector<8x1xf32>
    %21 = math.rsqrt %20 : vector<8x1xf32>
    %22 = vector.broadcast %15 : vector<8x1xf32> to vector<8x8xf32>
    %23 = arith.mulf %7, %22 : vector<8x8xf32>
    %c0_8 = arith.constant 0 : index
    %c0_9 = arith.constant 0 : index
    %24 = vector.load %arg4[%c0_8, %c0_9] : memref<4x8xf32, #tpu.memory_space<vmem>>, vector<1x8xf32>
    %25 = vector.broadcast %24 : vector<1x8xf32> to vector<8x8xf32>
    %26 = arith.mulf %23, %25 : vector<8x8xf32>
    %27 = vector.broadcast %21 : vector<8x1xf32> to vector<8x8xf32>
    %28 = arith.mulf %8, %27 : vector<8x8xf32>
    %c0_10 = arith.constant 0 : index
    %c0_11 = arith.constant 0 : index
    %29 = vector.load %arg5[%c0_10, %c0_11] : memref<4x8xf32, #tpu.memory_space<vmem>>, vector<1x8xf32>
    %30 = vector.broadcast %29 : vector<1x8xf32> to vector<8x8xf32>
    %31 = arith.mulf %28, %30 : vector<8x8xf32>
    %32 = arith.truncf %26 : vector<8x8xf32> to vector<8x8xbf16>
    %33 = arith.truncf %31 : vector<8x8xf32> to vector<8x8xbf16>
    %cst_12 = arith.constant dense<0.000000e+00> : vector<8x8xf32>
    %34 = tpu.matmul %32, %33, %cst_12 {dimension_numbers = #tpu.dot_dimension_numbers<[1], [1], [0], [0], [0, 0, 1, 0], [], []>} : vector<8x8xbf16>, vector<8x8xbf16>, vector<8x8xf32> -> vector<8x8xf32>
    %cst_13 = arith.constant dense<0xFF800000> : vector<8xf32>
    %35 = vector.multi_reduction <maximumf>, %34, %cst_13 [1] : vector<8x8xf32> to vector<8xf32>
    %36 = vector.shape_cast %35 : vector<8xf32> to vector<8x1xf32>
    %37 = vector.broadcast %36 : vector<8x1xf32> to vector<8x8xf32>
    %38 = arith.subf %34, %37 : vector<8x8xf32>
    %39 = math.exp %38 : vector<8x8xf32>
    %cst_14 = arith.constant dense<0.000000e+00> : vector<8xf32>
    %40 = vector.multi_reduction <add>, %39, %cst_14 [1] : vector<8x8xf32> to vector<8xf32>
    %41 = vector.shape_cast %40 : vector<8xf32> to vector<8x1xf32>
    %42 = arith.truncf %39 : vector<8x8xf32> to vector<8x8xbf16>
    %43 = arith.truncf %9 : vector<8x8xf32> to vector<8x8xbf16>
    %cst_15 = arith.constant dense<0.000000e+00> : vector<8x8xf32>
    %44 = tpu.matmul %42, %43, %cst_15 {dimension_numbers = #tpu.dot_dimension_numbers<[1], [0], [0], [1], [0, 0, 1, 1], [], []>} : vector<8x8xbf16>, vector<8x8xbf16>, vector<8x8xf32> -> vector<8x8xf32>
    %45 = tpu.reciprocal %41 {approx = true} : vector<8x1xf32> -> vector<8x1xf32>
    %46 = vector.broadcast %45 : vector<8x1xf32> to vector<8x8xf32>
    %47 = arith.mulf %44, %46 : vector<8x8xf32>
    %48 = arith.truncf %47 : vector<8x8xf32> to vector<8x8xbf16>
    %c0_16 = arith.constant 0 : index
    %c0_17 = arith.constant 0 : index
    %49 = vector.load %arg7[%c0_16, %c0_17] : memref<8x32xbf16, #tpu.memory_space<vmem>>, vector<8x8xbf16>
    tpu.vector_store %arg7[%c0_16, %c0_17], %48 {strides = array<i32>} : memref<8x32xbf16, #tpu.memory_space<vmem>>, vector<8x8xbf16>,
    %50 = vector.extract_strided_slice %4 {offsets = [0, 8], sizes = [8, 8], strides = [1, 1]} : vector<8x32xf32> to vector<8x8xf32>
    %51 = vector.extract_strided_slice %5 {offsets = [0, 8], sizes = [8, 8], strides = [1, 1]} : vector<8x32xf32> to vector<8x8xf32>
    %52 = vector.extract_strided_slice %6 {offsets = [0, 8], sizes = [8, 8], strides = [1, 1]} : vector<8x32xf32> to vector<8x8xf32>
    %53 = arith.mulf %50, %50 : vector<8x8xf32>
    %cst_18 = arith.constant dense<0.000000e+00> : vector<8xf32>
    %54 = vector.multi_reduction <add>, %53, %cst_18 [1] : vector<8x8xf32> to vector<8xf32>
    %55 = vector.shape_cast %54 : vector<8xf32> to vector<8x1xf32>
    %cst_19 = arith.constant 9.99999996E-13 : f32
    %56 = vector.broadcast %cst_19 : f32 to vector<8x1xf32>
    %57 = arith.maximumf %55, %56 : vector<8x1xf32>
    %58 = math.rsqrt %57 : vector<8x1xf32>
    %59 = arith.mulf %51, %51 : vector<8x8xf32>
    %cst_20 = arith.constant dense<0.000000e+00> : vector<8xf32>
    %60 = vector.multi_reduction <add>, %59, %cst_20 [1] : vector<8x8xf32> to vector<8xf32>
    %61 = vector.shape_cast %60 : vector<8xf32> to vector<8x1xf32>
    %cst_21 = arith.constant 9.99999996E-13 : f32
    %62 = vector.broadcast %cst_21 : f32 to vector<8x1xf32>
    %63 = arith.maximumf %61, %62 : vector<8x1xf32>
    %64 = math.rsqrt %63 : vector<8x1xf32>
    %65 = vector.broadcast %58 : vector<8x1xf32> to vector<8x8xf32>
    %66 = arith.mulf %50, %65 : vector<8x8xf32>
    %c1 = arith.constant 1 : index
    %c0_22 = arith.constant 0 : index
    %67 = vector.load %arg4[%c1, %c0_22] : memref<4x8xf32, #tpu.memory_space<vmem>>, vector<1x8xf32>
    %68 = vector.broadcast %67 : vector<1x8xf32> to vector<8x8xf32>
    %69 = arith.mulf %66, %68 : vector<8x8xf32>
    %70 = vector.broadcast %64 : vector<8x1xf32> to vector<8x8xf32>
    %71 = arith.mulf %51, %70 : vector<8x8xf32>
    %c1_23 = arith.constant 1 : index
    %c0_24 = arith.constant 0 : index
    %72 = vector.load %arg5[%c1_23, %c0_24] : memref<4x8xf32, #tpu.memory_space<vmem>>, vector<1x8xf32>
    %73 = vector.broadcast %72 : vector<1x8xf32> to vector<8x8xf32>
    %74 = arith.mulf %71, %73 : vector<8x8xf32>
    %75 = arith.truncf %69 : vector<8x8xf32> to vector<8x8xbf16>
    %76 = arith.truncf %74 : vector<8x8xf32> to vector<8x8xbf16>
    %cst_25 = arith.constant dense<0.000000e+00> : vector<8x8xf32>
    %77 = tpu.matmul %75, %76, %cst_25 {dimension_numbers = #tpu.dot_dimension_numbers<[1], [1], [0], [0], [0, 0, 1, 0], [], []>} : vector<8x8xbf16>, vector<8x8xbf16>, vector<8x8xf32> -> vector<8x8xf32>
    %cst_26 = arith.constant dense<0xFF800000> : vector<8xf32>
    %78 = vector.multi_reduction <maximumf>, %77, %cst_26 [1] : vector<8x8xf32> to vector<8xf32>
    %79 = vector.shape_cast %78 : vector<8xf32> to vector<8x1xf32>
    %80 = vector.broadcast %79 : vector<8x1xf32> to vector<8x8xf32>
    %81 = arith.subf %77, %80 : vector<8x8xf32>
    %82 = math.exp %81 : vector<8x8xf32>
    %cst_27 = arith.constant dense<0.000000e+00> : vector<8xf32>
    %83 = vector.multi_reduction <add>, %82, %cst_27 [1] : vector<8x8xf32> to vector<8xf32>
    %84 = vector.shape_cast %83 : vector<8xf32> to vector<8x1xf32>
    %85 = arith.truncf %82 : vector<8x8xf32> to vector<8x8xbf16>
    %86 = arith.truncf %52 : vector<8x8xf32> to vector<8x8xbf16>
    %cst_28 = arith.constant dense<0.000000e+00> : vector<8x8xf32>
    %87 = tpu.matmul %85, %86, %cst_28 {dimension_numbers = #tpu.dot_dimension_numbers<[1], [0], [0], [1], [0, 0, 1, 1], [], []>} : vector<8x8xbf16>, vector<8x8xbf16>, vector<8x8xf32> -> vector<8x8xf32>
    %88 = tpu.reciprocal %84 {approx = true} : vector<8x1xf32> -> vector<8x1xf32>
    %89 = vector.broadcast %88 : vector<8x1xf32> to vector<8x8xf32>
    %90 = arith.mulf %87, %89 : vector<8x8xf32>
    %91 = arith.truncf %90 : vector<8x8xf32> to vector<8x8xbf16>
    %c0_29 = arith.constant 0 : index
    %c8 = arith.constant 8 : index
    %92 = vector.load %arg7[%c0_29, %c8] : memref<8x32xbf16, #tpu.memory_space<vmem>>, vector<8x8xbf16>
    tpu.vector_store %arg7[%c0_29, %c8], %91 {strides = array<i32>} : memref<8x32xbf16, #tpu.memory_space<vmem>>, vector<8x8xbf16>,
    %93 = vector.extract_strided_slice %4 {offsets = [0, 16], sizes = [8, 8], strides = [1, 1]} : vector<8x32xf32> to vector<8x8xf32>
    %94 = vector.extract_strided_slice %5 {offsets = [0, 16], sizes = [8, 8], strides = [1, 1]} : vector<8x32xf32> to vector<8x8xf32>
    %95 = vector.extract_strided_slice %6 {offsets = [0, 16], sizes = [8, 8], strides = [1, 1]} : vector<8x32xf32> to vector<8x8xf32>
    %96 = arith.mulf %93, %93 : vector<8x8xf32>
    %cst_30 = arith.constant dense<0.000000e+00> : vector<8xf32>
    %97 = vector.multi_reduction <add>, %96, %cst_30 [1] : vector<8x8xf32> to vector<8xf32>
    %98 = vector.shape_cast %97 : vector<8xf32> to vector<8x1xf32>
    %cst_31 = arith.constant 9.99999996E-13 : f32
    %99 = vector.broadcast %cst_31 : f32 to vector<8x1xf32>
    %100 = arith.maximumf %98, %99 : vector<8x1xf32>
    %101 = math.rsqrt %100 : vector<8x1xf32>
    %102 = arith.mulf %94, %94 : vector<8x8xf32>
    %cst_32 = arith.constant dense<0.000000e+00> : vector<8xf32>
    %103 = vector.multi_reduction <add>, %102, %cst_32 [1] : vector<8x8xf32> to vector<8xf32>
    %104 = vector.shape_cast %103 : vector<8xf32> to vector<8x1xf32>
    %cst_33 = arith.constant 9.99999996E-13 : f32
    %105 = vector.broadcast %cst_33 : f32 to vector<8x1xf32>
    %106 = arith.maximumf %104, %105 : vector<8x1xf32>
    %107 = math.rsqrt %106 : vector<8x1xf32>
    %108 = vector.broadcast %101 : vector<8x1xf32> to vector<8x8xf32>
    %109 = arith.mulf %93, %108 : vector<8x8xf32>
    %c2 = arith.constant 2 : index
    %c0_34 = arith.constant 0 : index
    %110 = vector.load %arg4[%c2, %c0_34] : memref<4x8xf32, #tpu.memory_space<vmem>>, vector<1x8xf32>
    %111 = vector.broadcast %110 : vector<1x8xf32> to vector<8x8xf32>
    %112 = arith.mulf %109, %111 : vector<8x8xf32>
    %113 = vector.broadcast %107 : vector<8x1xf32> to vector<8x8xf32>
    %114 = arith.mulf %94, %113 : vector<8x8xf32>
    %c2_35 = arith.constant 2 : index
    %c0_36 = arith.constant 0 : index
    %115 = vector.load %arg5[%c2_35, %c0_36] : memref<4x8xf32, #tpu.memory_space<vmem>>, vector<1x8xf32>
    %116 = vector.broadcast %115 : vector<1x8xf32> to vector<8x8xf32>
    %117 = arith.mulf %114, %116 : vector<8x8xf32>
    %118 = arith.truncf %112 : vector<8x8xf32> to vector<8x8xbf16>
    %119 = arith.truncf %117 : vector<8x8xf32> to vector<8x8xbf16>
    %cst_37 = arith.constant dense<0.000000e+00> : vector<8x8xf32>
    %120 = tpu.matmul %118, %119, %cst_37 {dimension_numbers = #tpu.dot_dimension_numbers<[1], [1], [0], [0], [0, 0, 1, 0], [], []>} : vector<8x8xbf16>, vector<8x8xbf16>, vector<8x8xf32> -> vector<8x8xf32>
    %cst_38 = arith.constant dense<0xFF800000> : vector<8xf32>
    %121 = vector.multi_reduction <maximumf>, %120, %cst_38 [1] : vector<8x8xf32> to vector<8xf32>
    %122 = vector.shape_cast %121 : vector<8xf32> to vector<8x1xf32>
    %123 = vector.broadcast %122 : vector<8x1xf32> to vector<8x8xf32>
    %124 = arith.subf %120, %123 : vector<8x8xf32>
    %125 = math.exp %124 : vector<8x8xf32>
    %cst_39 = arith.constant dense<0.000000e+00> : vector<8xf32>
    %126 = vector.multi_reduction <add>, %125, %cst_39 [1] : vector<8x8xf32> to vector<8xf32>
    %127 = vector.shape_cast %126 : vector<8xf32> to vector<8x1xf32>
    %128 = arith.truncf %125 : vector<8x8xf32> to vector<8x8xbf16>
    %129 = arith.truncf %95 : vector<8x8xf32> to vector<8x8xbf16>
    %cst_40 = arith.constant dense<0.000000e+00> : vector<8x8xf32>
    %130 = tpu.matmul %128, %129, %cst_40 {dimension_numbers = #tpu.dot_dimension_numbers<[1], [0], [0], [1], [0, 0, 1, 1], [], []>} : vector<8x8xbf16>, vector<8x8xbf16>, vector<8x8xf32> -> vector<8x8xf32>
    %131 = tpu.reciprocal %127 {approx = true} : vector<8x1xf32> -> vector<8x1xf32>
    %132 = vector.broadcast %131 : vector<8x1xf32> to vector<8x8xf32>
    %133 = arith.mulf %130, %132 : vector<8x8xf32>
    %134 = arith.truncf %133 : vector<8x8xf32> to vector<8x8xbf16>
    %c0_41 = arith.constant 0 : index
    %c16 = arith.constant 16 : index
    %135 = vector.load %arg7[%c0_41, %c16] : memref<8x32xbf16, #tpu.memory_space<vmem>>, vector<8x8xbf16>
    tpu.vector_store %arg7[%c0_41, %c16], %134 {strides = array<i32>} : memref<8x32xbf16, #tpu.memory_space<vmem>>, vector<8x8xbf16>,
    %136 = vector.extract_strided_slice %4 {offsets = [0, 24], sizes = [8, 8], strides = [1, 1]} : vector<8x32xf32> to vector<8x8xf32>
    %137 = vector.extract_strided_slice %5 {offsets = [0, 24], sizes = [8, 8], strides = [1, 1]} : vector<8x32xf32> to vector<8x8xf32>
    %138 = vector.extract_strided_slice %6 {offsets = [0, 24], sizes = [8, 8], strides = [1, 1]} : vector<8x32xf32> to vector<8x8xf32>
    %139 = arith.mulf %136, %136 : vector<8x8xf32>
    %cst_42 = arith.constant dense<0.000000e+00> : vector<8xf32>
    %140 = vector.multi_reduction <add>, %139, %cst_42 [1] : vector<8x8xf32> to vector<8xf32>
    %141 = vector.shape_cast %140 : vector<8xf32> to vector<8x1xf32>
    %cst_43 = arith.constant 9.99999996E-13 : f32
    %142 = vector.broadcast %cst_43 : f32 to vector<8x1xf32>
    %143 = arith.maximumf %141, %142 : vector<8x1xf32>
    %144 = math.rsqrt %143 : vector<8x1xf32>
    %145 = arith.mulf %137, %137 : vector<8x8xf32>
    %cst_44 = arith.constant dense<0.000000e+00> : vector<8xf32>
    %146 = vector.multi_reduction <add>, %145, %cst_44 [1] : vector<8x8xf32> to vector<8xf32>
    %147 = vector.shape_cast %146 : vector<8xf32> to vector<8x1xf32>
    %cst_45 = arith.constant 9.99999996E-13 : f32
    %148 = vector.broadcast %cst_45 : f32 to vector<8x1xf32>
    %149 = arith.maximumf %147, %148 : vector<8x1xf32>
    %150 = math.rsqrt %149 : vector<8x1xf32>
    %151 = vector.broadcast %144 : vector<8x1xf32> to vector<8x8xf32>
    %152 = arith.mulf %136, %151 : vector<8x8xf32>
    %c3 = arith.constant 3 : index
    %c0_46 = arith.constant 0 : index
    %153 = vector.load %arg4[%c3, %c0_46] : memref<4x8xf32, #tpu.memory_space<vmem>>, vector<1x8xf32>
    %154 = vector.broadcast %153 : vector<1x8xf32> to vector<8x8xf32>
    %155 = arith.mulf %152, %154 : vector<8x8xf32>
    %156 = vector.broadcast %150 : vector<8x1xf32> to vector<8x8xf32>
    %157 = arith.mulf %137, %156 : vector<8x8xf32>
    %c3_47 = arith.constant 3 : index
    %c0_48 = arith.constant 0 : index
    %158 = vector.load %arg5[%c3_47, %c0_48] : memref<4x8xf32, #tpu.memory_space<vmem>>, vector<1x8xf32>
    %159 = vector.broadcast %158 : vector<1x8xf32> to vector<8x8xf32>
    %160 = arith.mulf %157, %159 : vector<8x8xf32>
    %161 = arith.truncf %155 : vector<8x8xf32> to vector<8x8xbf16>
    %162 = arith.truncf %160 : vector<8x8xf32> to vector<8x8xbf16>
    %cst_49 = arith.constant dense<0.000000e+00> : vector<8x8xf32>
    %163 = tpu.matmul %161, %162, %cst_49 {dimension_numbers = #tpu.dot_dimension_numbers<[1], [1], [0], [0], [0, 0, 1, 0], [], []>} : vector<8x8xbf16>, vector<8x8xbf16>, vector<8x8xf32> -> vector<8x8xf32>
    %cst_50 = arith.constant dense<0xFF800000> : vector<8xf32>
    %164 = vector.multi_reduction <maximumf>, %163, %cst_50 [1] : vector<8x8xf32> to vector<8xf32>
    %165 = vector.shape_cast %164 : vector<8xf32> to vector<8x1xf32>
    %166 = vector.broadcast %165 : vector<8x1xf32> to vector<8x8xf32>
    %167 = arith.subf %163, %166 : vector<8x8xf32>
    %168 = math.exp %167 : vector<8x8xf32>
    %cst_51 = arith.constant dense<0.000000e+00> : vector<8xf32>
    %169 = vector.multi_reduction <add>, %168, %cst_51 [1] : vector<8x8xf32> to vector<8xf32>
    %170 = vector.shape_cast %169 : vector<8xf32> to vector<8x1xf32>
    %171 = arith.truncf %168 : vector<8x8xf32> to vector<8x8xbf16>
    %172 = arith.truncf %138 : vector<8x8xf32> to vector<8x8xbf16>
    %cst_52 = arith.constant dense<0.000000e+00> : vector<8x8xf32>
    %173 = tpu.matmul %171, %172, %cst_52 {dimension_numbers = #tpu.dot_dimension_numbers<[1], [0], [0], [1], [0, 0, 1, 1], [], []>} : vector<8x8xbf16>, vector<8x8xbf16>, vector<8x8xf32> -> vector<8x8xf32>
    %174 = tpu.reciprocal %170 {approx = true} : vector<8x1xf32> -> vector<8x1xf32>
    %175 = vector.broadcast %174 : vector<8x1xf32> to vector<8x8xf32>
    %176 = arith.mulf %173, %175 : vector<8x8xf32>
    %177 = arith.truncf %176 : vector<8x8xf32> to vector<8x8xbf16>
    %c0_53 = arith.constant 0 : index
    %c24 = arith.constant 24 : index
    %178 = vector.load %arg7[%c0_53, %c24] : memref<8x32xbf16, #tpu.memory_space<vmem>>, vector<8x8xbf16>
    tpu.vector_store %arg7[%c0_53, %c24], %177 {strides = array<i32>} : memref<8x32xbf16, #tpu.memory_space<vmem>>, vector<8x8xbf16>,
    %c0_54 = arith.constant 0 : index
    %c0_55 = arith.constant 0 : index
    %179 = vector.load %arg7[%c0_54, %c0_55] : memref<8x32xbf16, #tpu.memory_space<vmem>>, vector<8x32xbf16>
    %c0_56 = arith.constant 0 : index
    %c0_57 = arith.constant 0 : index
    %180 = vector.load %arg3[%c0_56, %c0_57] : memref<32x32xbf16, #tpu.memory_space<vmem>>, vector<32x32xbf16>
    %cst_58 = arith.constant dense<0.000000e+00> : vector<8x32xf32>
    %181 = tpu.matmul %179, %180, %cst_58 {dimension_numbers = #tpu.dot_dimension_numbers<[1], [0], [0], [1], [0, 0, 1, 1], [], []>} : vector<8x32xbf16>, vector<32x32xbf16>, vector<8x32xf32> -> vector<8x32xf32>
    %c0_59 = arith.constant 0 : index
    %c0_60 = arith.constant 0 : index
    %c0_61 = arith.constant 0 : index
    %182 = vector.load %arg6[%c0_59, %c0_60, %c0_61] : memref<1x8x32xf32, #tpu.memory_space<vmem>>, vector<1x8x32xf32>
    %183 = vector.shape_cast %182 : vector<1x8x32xf32> to vector<8x32xf32>
    %184 = vector.shape_cast %181 : vector<8x32xf32> to vector<1x8x32xf32>
    tpu.vector_store %arg6[%c0_59, %c0_60, %c0_61], %184 {strides = array<i32>} : memref<1x8x32xf32, #tpu.memory_space<vmem>>, vector<1x8x32xf32>,
    return
  }
  func.func @transform_0(%arg0: i32) -> (i32, i32, i32) {
    %c0_i32 = arith.constant 0 : i32
    %c0_i32_0 = arith.constant 0 : i32
    %c0_i32_1 = arith.constant 0 : i32
    return %arg0, %c0_i32, %c0_i32_0 : i32, i32, i32
  }
  func.func @transform_1(%arg0: i32) -> (i32, i32) {
    %c0_i32 = arith.constant 0 : i32
    %c0_i32_0 = arith.constant 0 : i32
    %c0_i32_1 = arith.constant 0 : i32
    return %c0_i32, %c0_i32_0 : i32, i32
  }
  func.func @transform_2(%arg0: i32) -> (i32, i32) {
    %c0_i32 = arith.constant 0 : i32
    %c0_i32_0 = arith.constant 0 : i32
    %c0_i32_1 = arith.constant 0 : i32
    return %c0_i32, %c0_i32_0 : i32, i32
  }
  func.func @transform_3(%arg0: i32) -> (i32, i32) {
    %c0_i32 = arith.constant 0 : i32
    %c0_i32_0 = arith.constant 0 : i32
    %c0_i32_1 = arith.constant 0 : i32
    return %c0_i32, %c0_i32_0 : i32, i32
  }
  func.func @transform_4(%arg0: i32) -> (i32, i32) {
    %c0_i32 = arith.constant 0 : i32
    %c0_i32_0 = arith.constant 0 : i32
    %c0_i32_1 = arith.constant 0 : i32
    return %c0_i32, %c0_i32_0 : i32, i32
  }
  func.func @transform_5(%arg0: i32) -> (i32, i32, i32) {
    %c0_i32 = arith.constant 0 : i32
    %c0_i32_0 = arith.constant 0 : i32
    %c0_i32_1 = arith.constant 0 : i32
    return %arg0, %c0_i32, %c0_i32_0 : i32, i32, i32
  }
}

</mosaic_0001>

<bundles_post_ra>
// kernel: tpu_custom_call.1
= control target key start
LH: loop header
LB: loop body
LE: loop exit
PB: predicated region body
PF: predicated region fallthrough
CT: control target
= control target key end

     0   :  { %10 = vsyncpa [#allocation4], 0  ;;  %s1677_s0 = inlined_call_operand.hbm [shape: bf16[2,8,32], index: 0, kind: input, shape index: {}]   ;;  %s1678_s1 = inlined_call_operand.hbm [shape: bf16[32,96], index: 1, kind: input, shape index: {}]   ;;  %s1679_s2 = inlined_call_operand.hbm [shape: bf16[32,32], index: 2, kind: input, shape index: {}]   ;;  %s1680_s3 = inlined_call_operand.hbm [shape: f32[4,8], index: 3, kind: input, shape index: {}]   ;;  %s1681_s4 = inlined_call_operand.hbm [shape: f32[4,8], index: 4, kind: input, shape index: {}]   ;;  %s1682_s5 = inlined_call_operand.hbm [shape: f32[2,8,32], index: 5, kind: output, shape index: {}]  }
   0x1   :  { %12 = vsyncpa [#allocation4 + $0x1], 0 }
   0x2   :  { %13 = vsyncpa [#allocation7], 0 }
   0x3   :  { %14 = vsyncpa [#allocation10], 0 }
   0x4   :  { %15 = vsyncpa [#allocation5], 0 }
   0x5   :  { %17 = vsyncpa [#allocation5 + $0x1], 0  ;;  %s1428_s18 = smov 0   ;;  %s1430_s19 = smov 0  }
   0x6   :  { %s1432_s20 = smov 0   ;;  %s1434_s21 = smov 0  }
   0x7 LB: > { %s175_s24 = sshll.u32 %s1678_s1, 4  ;;  %s1452_s25 = sadd.s32 4294967295, %s1375_s21   ;;  %s1375_s21 = sphi %s1434_s21, %s1694_s21   ;;  %s1371_s20 = sphi %s1432_s20, %s1693_s20   ;;  %s1367_s19 = sphi %s1430_s19, %s1692_s19   ;;  %s1363_s18 = sphi %s1428_s18, %s1691_s18   ;;  %s176_s24 = int_to_ptr.hbm [resolvable:$true] %s175_s24 }
   0x8   : > { %p958_p0 = scmp.ge.s32.totalorder %s1375_s21, 1  ;;  %p44_p1 = scmp.eq.s32.totalorder %s1452_s25, 0 }
   0x9   : > { %p164_p2 = scmp.lt.s32.totalorder %s1375_s21, 3  ;;  %s1377_s27 = smov [#allocation6]  }
   0xa   : > { %s177_s28 = sshll.u32 %s1377_s27, 4  ;;  %s204_s6 = sshll.u32 %s1680_s3, 4  ;;  %s178_s28 = int_to_ptr.vmem [resolvable:$true] %s177_s28  ;;  %s205_s6 = int_to_ptr.hbm [resolvable:$true] %s204_s6 }
   0xb   : > { %p1457_p3 = pnand %p958_p0, %p164_p2  ;;  %s189_s10 = sshll.u32 %s1679_s2, 4  ;;  %s190_s10 = int_to_ptr.hbm [resolvable:$true] %s189_s10 }
   0xc   : > { %s1378_s11 = smov [#allocation9]   ;;  %s1379_s13 = smov 64  }
   0xd   : > { %p1027_p4 = pneg %p1457_p3  ;;  %s206_s12 = sshll.u32 %s1378_s11, 4  ;;  %s207_s12 = int_to_ptr.vmem [resolvable:$true] %s206_s12 }
   0xe   : > { %s1380_s14 = smov 4   ;;  %s216_s17 = sshll.u32 %s1681_s4, 4  ;;  %s217_s17 = int_to_ptr.hbm [resolvable:$true] %s216_s17 }
   0xf   : > { %p1469_p6 = pnand %p1027_p4, %p44_p1  ;;  %s1381_s22 = smov [#allocation8]  }
  0x10   : > { %s191_s23 = sshll.u32 %s1381_s22, 4  ;;  %s1489_s29 = sadd.s32 1, %s1375_s21   ;;  %s192_s23 = int_to_ptr.vmem [resolvable:$true] %s191_s23 }
  0x11   : > { %1030 = dma.hbm_to_vmem [thread:$0]  (!%p1469_p6), %s176_s24, 256, %s178_s28, [#allocation7], %s1379_s13, %s1379_s13, %s1380_s14  }
  0x12   : > { %1036 = dma.hbm_to_vmem [thread:$0]  (!%p1469_p6), %s205_s6, 64, %s207_s12, [#allocation10]  }
  0x13   : > { %1033 = dma.hbm_to_vmem [thread:$0]  (!%p1469_p6), %s190_s10, 256, %s192_s23, [#allocation7], %s1379_s13, %s1379_s13, %s1380_s14  }
  0x14   : > { %s1382_s24 = smov [#allocation11]   ;;  %s957_s28 = sadd.s32 4294967294, %s1375_s21  }
  0x15   : > { %s218_s27 = sshll.u32 %s1382_s24, 4  ;;  %s27_s30 = ssub.s32 %s1375_s21, %s1489_s29  ;;  %s219_s27 = int_to_ptr.vmem [resolvable:$true] %s218_s27 }
  0x16   : > { %1039 = dma.hbm_to_vmem [thread:$0]  (!%p1469_p6), %s217_s17, 64, %s219_s27, [#allocation10]  }
  0x17   : > { %s30_s6 = sadd.s32 1, %s1371_s20  ;;  %p28_p7 = scmp.eq.s32.totalorder %s27_s30, 0 }
  0x18   : > { %p37_p8 = scmp.ne.s32.totalorder %s1371_s20, %s1367_s19  ;;  %p38_p9 = scmp.eq.s32.totalorder %s1375_s21, 0 }
  0x19   : > { %p43_p10 = scmp.ne.s32.totalorder %s1367_s19, %s1363_s18  ;;  %p151_p13 = scmp.eq.s32.totalorder %s1452_s25, 1 }
  0x1a   : > { %s1500_s8 = scalar_select %p28_p7, %s1371_s20, %s30_s6  }
  0x1b   : > { %p1502_p11 = por %p38_p9, %p37_p8  ;;  %p1508_p12 = por %p44_p1, %p43_p10 }
  0x1c   : > { %p157_p0 = scmp.eq.s32.totalorder %s957_s28, 1  ;;  %p1052_p2 = scmp.lt.s32.totalorder %s1375_s21, 2 }
  0x1d   : > { %s229_s10 = sand.u32 1, %s1371_s20   ;;  %p1515_p4 = por %p151_p13, %p37_p8 }
  0x1e   : > { %p1519_p6 = por %p157_p0, %p43_p10  ;;  %s964_s13 = sshll.u32 %s229_s10, 2 }
  0x1f   : > { %s965_s14 = sshll.u32 %s1375_s21, 2  ;;  %s233_s22 = scalar_lea.vmem [#allocation3], %s964_s13 }
  0x20   : > { %s237_s17 = scalar_lea.hbm %s1677_s0, %s965_s14  ;;  %s241_s23 = sshll.u32 %s233_s22, 4  ;;  %s242_s23 = int_to_ptr.vmem [resolvable:$true] %s241_s23 }
  0x21   : > { %s239_s24 = sshll.u32 %s237_s17, 4  ;;  %p1529_p7 = pnand %p1052_p2, %p1502_p11  ;;  %s240_s24 = int_to_ptr.hbm [resolvable:$true] %s239_s24 }
  0x22   : > { %s230_s28 = scalar_lea.sflag [#allocation4], %s229_s10  ;;  %s1271_s30 = sshra.s32 %s240_s24, 4  ;;  %s1272_s30 = int_to_ptr.hbm [resolvable:$true] %s1271_s30 }
  0x23   : > { %s1273_s6 = scalar_lea.hbm %s1272_s30, 4  ;;  %p1275_p9 = pneg %p1529_p7 }
  0x24   : > { %p1274_p8 = scmp.ne.s32.totalorder %s1272_s30, %s1273_s6  ;;  %s1278_s15 = scalar_lea.hbm %s1677_s0, 8 }
  0x25   : > { %p1279_p11 = scmp.lt.s32.totalorder %s1272_s30, %s1677_s0  ;;  %p1280_p0 = scmp.lt.s32.totalorder %s1278_s15, %s1273_s6 }
  0x26   : > { %p1276_p10 = pnand %p1275_p9, %p1274_p8 }
  0x27   : > { %p1281_p2 = por %p1280_p0, %p1279_p11 }
  0x28   : > { %p1277_p13 = pneg %p1276_p10 }
  0x2a   : > { %p1282_p5 = pnand %p1281_p2, %p1277_p13 }
  0x2c   : > { %1285 = shalt.err (!%p1282_p5)
}
  0x2d   : > { %1043 = dma.hbm_to_vmem [thread:$0]  (!%p1529_p7), %s240_s24, 64, %s242_s23, %s230_s28  }
  0x2e   : > { %250 = sbr.rel (%p1457_p3) target bundleno = 1317 (0x525), region = 40  ;;  %s1546_s10 = sand.u32 (!%p1457_p3), 1, %s1367_s19  }
  0x2f   : > { %s967_s17 = sshll.u32 (!%p1457_p3), %s1546_s10, 2  ;;  %s253_s22 = scalar_lea.sflag (!%p1457_p3), [#allocation4], %s1546_s10 }
  0x30   : > { %s256_s13 = scalar_lea.vmem (!%p1457_p3), [#allocation3], %s967_s17 }
  0x33   : > { %1346 = dma.done.wait (%p1508_p12), %s253_s22, 64  }
  0x34   : > { %1348 = vsyncadd (%p1508_p12), %s253_s22, 4294967232 }
  0x35   : > { %1350 = dma.done.wait (%p44_p1), [#allocation7], 512  }
  0x36   : > { %1352 = vsyncadd (%p44_p1), [#allocation7], 4294966784 }
  0x37   : > { %1354 = dma.done.wait (%p44_p1), [#allocation10], 128  }
  0x38   : > { %1356 = vsyncadd (%p44_p1), [#allocation10], 4294967168  ;;  %v1004_v0 = vld [vmem:[#allocation6 + $0x8] sm:$0xff]  ;;  %v1003_v1 = vld [vmem:[#allocation6] sm:$0xff]  ;;  %s1383_s26 = smov 32   ;;  %vm322_vm0 = vcmask 261120  }
  0x39   : > { %v1111_v2 = vld [vmem:[#allocation11] ss:$0 sm:$0xff]  ;;  %332 = vmatpush.bf16.msra.mxu0 %v1004_v0  ;;  %v305_v3 = vld [vmem:[%s256_s13] sm:$0xf]  ;;  %s1384_s7 = smov 104   ;;  %s1385_s23 = smov 120  }
  0x3a   : > { %381 = vrot.lane.b32.xlu2 %v1111_v2, %s1383_s26  ;;  %s1386_s24 = smov 96   ;;  %s1387_s27 = smov 80   ;;  %vm340_vm1 = vcmask 64512   ;;  %v1112_v15 = vld [vmem:[#allocation9 + $0x3] ss:$0 sm:$0xff] }
  0x3b   : > { %s1388_s28 = smov 72   ;;  %s1389_s30 = smov 88   ;;  %v1113_v16 = vld [vmem:[#allocation11 + $0x1] ss:$0 sm:$0xff]  ;;  %v1114_v17 = vld [vmem:[#allocation9 + $0x1] ss:$0 sm:$0xff] }
  0x3c   : > { %s1390_s6 = smov 112   ;;  %s1391_s14 = smov 24   ;;  %v1115_v18 = vld [vmem:[#allocation11 + $0x3] ss:$0 sm:$0xff]  ;;  %v1116_v27 = vld [vmem:[#allocation11 + $0x2] ss:$0 sm:$0xff] }
  0x3d   : > { %333 = vmatpush.bf16.msra.mxu0 %v1003_v1  ;;  %s1392_s15 = smov 40   ;;  %s1393_s16 = smov 8  }
  0x3e   : > { %s1394_s9 = smov 56   ;;  %s1395_s17 = smov 48  }
  0x3f   : > { %s1396_s22 = smov 16   ;;  %s1397_s13 = smov 64  }
  0x40   : > { %981 = vmatmul.msk.bf16.vlgmr.msra.gmra.mxu0 %vm322_vm0, %v305_v3  ;;  %s1000_s26 = sshll.u32 %s1452_s25, 3 }
  0x94   : > { %v382_v19 = vpop.permute.xlu2 %381 }
  0xbd   : > { %v1563_v4 = vpop.f32.mrf.mxu0 }
  0xbe   : > { %v339_v5 = vmul.f32 %v1563_v4, %v1563_v4 }
  0xc0   : > { %682 = vrot.lane.b32.xlu2 %v339_v5, %s1384_s7  ;;  %448 = vrot.lane.b32.xlu1 %v339_v5, %s1385_s23  ;;  %v341_v22 = vsel %vm340_vm1, %v339_v5, 0.0 }
  0xc1   : > { %356 = vrot.lane.b32.xlu0 %v339_v5, %s1386_s24 }
  0xc5   : > { %v337_v6 = vpop.f32.mrf.mxu0 }
  0xc8   : > { %582 = vrot.lane.b32.xlu2 %v339_v5, %s1387_s27  ;;  %699 = vrot.lane.b32.xlu1 %v339_v5, %s1388_s28 }
  0xc9   : > { %465 = vrot.lane.b32.xlu0 %v339_v5, %s1389_s30 }
  0xd0   : > { %565 = vrot.lane.b32.xlu1 %v339_v5, %s1390_s6 }
 0x11a   : > { %v683_v20 = vpop.permute.xlu2 %682 }
 0x11b   : > { %v685_v21 = vsel %vm340_vm1, %v683_v20, 0.0 }
 0x122   : > { %v583_v23 = vpop.permute.xlu2 %582 }
 0x123   : > { %v585_v24 = vsel %vm340_vm1, %v583_v23, 0.0 }
 0x132   : > { %v449_v7 = vpop.permute.xlu1 %448 }
 0x133   : > { %v357_v8 = vpop.permute.xlu0 %356  ;;  %v451_v9 = vsel %vm340_vm1, %v449_v7, 0.0 }
 0x134   : > { %452 = vadd.xlane.f32.xlu1 %v451_v9  ;;  %v359_v10 = vsel %vm340_vm1, %v357_v8, 0.0  ;;  %v1117_v8 = vld [vmem:[#allocation9 + $0x2] ss:$0 sm:$0xff] }
 0x135   : > { %360 = vadd.xlane.f32.xlu0 %v359_v10 }
 0x13a   : > { %v700_v11 = vpop.permute.xlu1 %699 }
 0x13b   : > { %v466_v12 = vpop.permute.xlu0 %465  ;;  %v702_v13 = vsel %vm340_vm1, %v700_v11, 0.0 }
 0x13c   : > { %v468_v14 = vsel %vm340_vm1, %v466_v12, 0.0 }
 0x13d   : > { %703 = vadd.xlane.f32.xlu0 %v702_v13  ;;  %469 = vadd.xlane.f32.xlu2 %v468_v14 }
 0x142   : > { %v566_v25 = vpop.permute.xlu1 %565 }
 0x143   : > { %v568_v26 = vsel %vm340_vm1, %v566_v25, 0.0 }
 0x14d   : > { %720 = vrot.lane.b32.xlu1 %v1112_v15, %s1391_s14 }
 0x151   : > { %494 = vrot.lane.b32.xlu0 %v1113_v16, %s1392_s15 }
 0x155   : > { %486 = vrot.lane.b32.xlu2 %v1114_v17, %s1393_s16 }
 0x15d   : > { %728 = vrot.lane.b32.xlu2 %v1115_v18, %s1394_s9 }
 0x165   : > { %611 = vrot.lane.b32.xlu2 %v1116_v27, %s1395_s17 }
 0x177   : > { %686 = vadd.xlane.f32.xlu1 %v685_v21 }
 0x17b   : > { %342 = vadd.xlane.f32.xlu0 %v341_v22 }
 0x17f   : > { %586 = vadd.xlane.f32.xlu1 %v585_v24 }
 0x187   : > { %569 = vadd.xlane.f32.xlu1 %v568_v26 }
 0x1a7   : > { %v453_v28 = vpop.xlane.xlu1 %452 }
 0x1a8   : > { %v454_v29 = vmax.f32 %v453_v28, 1e-12  ;;  %v361_v30 = vpop.xlane.xlu0 %360 }
 0x1a9   : > { %v362_v31 = vmax.f32 %v361_v30, 1e-12 }
 0x1aa   : > { %1119 = vrsqrt.f32 %v454_v29  ;;  %vm461_vm9 = vweird.f32 %v454_v29 }
 0x1ab   : > { %1121 = vrsqrt.f32 %v362_v31  ;;  %vm369_vm3 = vweird.f32 %v362_v31 }
 0x1b0   : > { %v1120_v32 = vpop.eup %1119  ;;  %v470_v33 = vpop.xlane.xlu2 %469 }
 0x1b1   : > { %v704_v34 = vpop.xlane.xlu0 %703  ;;  %v1122_v35 = vpop.eup %1121  ;;  %v471_v36 = vmax.f32 %v470_v33, 1e-12  ;;  %v456_v38 = vmul.f32 %v1120_v32, %v454_v29  ;;  %vm462_vm6 = vweird.f32 %v1120_v32 }
 0x1b2   : > { %v705_v37 = vmax.f32 %v704_v34, 1e-12  ;;  %v364_v39 = vmul.f32 %v1122_v35, %v362_v31  ;;  %vm370_vm2 = vweird.f32 %v1122_v35  ;;  %vm463_vm12 = vmor %vm461_vm9, %vm462_vm6 }
 0x1b3   : > { %1123 = vrsqrt.f32 %v471_v36  ;;  %v457_v41 = vmul.f32 %v1120_v32, %v456_v38  ;;  %vm371_vm4 = vmor %vm369_vm3, %vm370_vm2  ;;  %vm478_vm7 = vweird.f32 %v471_v36 }
 0x1b4   : > { %v365_v40 = vmul.f32 %v1122_v35, %v364_v39  ;;  %1125 = vrsqrt.f32 %v705_v37  ;;  %vm712_vm11 = vweird.f32 %v705_v37 }
 0x1b5   : > { %v458_v46 = vmul.f32 0.5, %v457_v41 }
 0x1b6   : > { %v366_v42 = vmul.f32 0.5, %v365_v40 }
 0x1b7   : > { %v459_v54 = vsub.f32 1.5, %v458_v46 }
 0x1b8   : > { %v367_v43 = vsub.f32 1.5, %v366_v42  ;;  %v487_v59 = vpop.permute.xlu2 %486 }
 0x1b9   : > { %v1124_v44 = vpop.eup %1123  ;;  %v460_v62 = vmul.f32 %v1120_v32, %v459_v54 }
 0x1ba   : > { %v1126_v45 = vpop.eup %1125  ;;  %v368_v47 = vmul.f32 %v1122_v35, %v367_v43  ;;  %v473_v48 = vmul.f32 %v1124_v44, %v471_v36  ;;  %vm479_vm5 = vweird.f32 %v1124_v44 }
 0x1bb   : > { %v707_v49 = vmul.f32 %v1126_v45, %v705_v37  ;;  %vm713_vm8 = vweird.f32 %v1126_v45  ;;  %vm480_vm10 = vmor %vm478_vm7, %vm479_vm5  ;;  %v464_v5 = vsel %vm463_vm12, %v1120_v32, %v460_v62  ;;  %vm426_vm12 = vcmask 1043456  }
 0x1bc   : > { %v474_v50 = vmul.f32 %v1124_v44, %v473_v48  ;;  %v372_v51 = vsel %vm371_vm4, %v1122_v35, %v368_v47  ;;  %vm714_vm13 = vmor %vm712_vm11, %vm713_vm8  ;;  %v482_v9 = vmul.f32 %v464_v5, %v1563_v4 }
 0x1bd   : > { %v708_v52 = vmul.f32 %v1126_v45, %v707_v49  ;;  %v377_v53 = vmul.f32 %v372_v51, %v1563_v4  ;;  %v1601_v51 = vpack.c.bf16 %v1563_v4, %v1563_v4 }
 0x1be   : > { %v475_v55 = vmul.f32 0.5, %v474_v50  ;;  %v489_v13 = vmul.f32 %v487_v59, %v482_v9 }
 0x1bf   : > { %v709_v56 = vmul.f32 0.5, %v708_v52  ;;  %v384_v57 = vmul.f32 %v382_v19, %v377_v53  ;;  %v721_v17 = vpop.permute.xlu1 %720 }
 0x1c0   : > { %v476_v58 = vsub.f32 1.5, %v475_v55  ;;  %v729_v12 = vpop.permute.xlu2 %728  ;;  %v498_v15 = vpack.c.bf16 %v489_v13, %v489_v13 }
 0x1c1   : > { %v710_v60 = vsub.f32 1.5, %v709_v56  ;;  %v386_v61 = vpack.c.bf16 %v384_v57, %v384_v57 }
 0x1c2   : > { %v477_v63 = vmul.f32 %v1124_v44, %v476_v58 }
 0x1c3   : > { %388 = vrot.lane.b32.xlu2 %v386_v61, %s1386_s24  ;;  %v711_v0 = vmul.f32 %v1126_v45, %v710_v60  ;;  %v495_v2 = vpop.permute.xlu0 %494  ;;  %v1118_v61 = vld [vmem:[#allocation9] ss:$0 sm:$0xff] }
 0x1c4   : > { %v481_v1 = vsel %vm480_vm10, %v1124_v44, %v477_v63 }
 0x1c5   : > { %v490_v3 = vmul.f32 %v481_v1, %v1563_v4  ;;  %v715_v6 = vsel %vm714_vm13, %v1126_v45, %v711_v0  ;;  %vm563_vm13 = vcmask 126016  }
 0x1c6   : > { %v724_v10 = vmul.f32 %v715_v6, %v1563_v4 }
 0x1c7   : > { %v497_v7 = vmul.f32 %v495_v2, %v490_v3 }
 0x1c8   : > { %v731_v14 = vmul.f32 %v729_v12, %v724_v10  ;;  %v612_v45 = vpop.permute.xlu2 %611 }
 0x1c9   : > { %v499_v11 = vpack.c.bf16 %v497_v7, %v497_v7 }
 0x1ca   : > { %v733_v16 = vpack.c.bf16 %v731_v14, %v731_v14 }
 0x1cb   : > { %603 = vrot.lane.b32.xlu2 %v1117_v8, %s1396_s22  ;;  %504 = vrot.lane.b32.xlu1 %v499_v11, %s1389_s30 }
 0x1d3   : > { %501 = vrot.lane.b32.xlu2 %v498_v15, %s1385_s23  ;;  %738 = vrot.lane.b32.xlu1 %v733_v16, %s1388_s28 }
 0x1ea   : > { %v687_v18 = vpop.xlane.xlu1 %686 }
 0x1eb   : > { %v688_v19 = vmax.f32 %v687_v18, 1e-12 }
 0x1ed   : > { %1127 = vrsqrt.f32 %v688_v19  ;;  %vm695_vm15 = vweird.f32 %v688_v19 }
 0x1ee   : > { %v343_v24 = vpop.xlane.xlu0 %342 }
 0x1ef   : > { %v344_v27 = vmax.f32 %v343_v24, 1e-12 }
 0x1f1   : > { %vm351_vm7 = vweird.f32 %v344_v27 }
 0x1f2   : > { %v587_v20 = vpop.xlane.xlu1 %586 }
 0x1f3   : > { %v1128_v21 = vpop.eup %1127  ;;  %v588_v22 = vmax.f32 %v587_v20, 1e-12 }
 0x1f4   : > { %v690_v23 = vmul.f32 %v1128_v21, %v688_v19  ;;  %vm696_vm14 = vweird.f32 %v1128_v21 }
 0x1f5   : > { %1129 = vrsqrt.f32 %v588_v22  ;;  %vm697_vm2 = vmor %vm695_vm15, %vm696_vm14  ;;  %vm595_vm4 = vweird.f32 %v588_v22  ;;  %vm680_vm14 = vcmask 191616   ;;  %vm797_vm15 = vcmask 257216  }
 0x1f6   : > { %v691_v25 = vmul.f32 %v1128_v21, %v690_v23  ;;  %1131 = vrsqrt.f32 %v344_v27 }
 0x1f8   : > { %v692_v26 = vmul.f32 0.5, %v691_v25 }
 0x1fa   : > { %v693_v28 = vsub.f32 1.5, %v692_v26  ;;  %v570_v32 = vpop.xlane.xlu1 %569 }
 0x1fb   : > { %v1130_v29 = vpop.eup %1129  ;;  %v571_v37 = vmax.f32 %v570_v32, 1e-12 }
 0x1fc   : > { %v694_v30 = vmul.f32 %v1128_v21, %v693_v28  ;;  %v590_v31 = vmul.f32 %v1130_v29, %v588_v22  ;;  %v1132_v39 = vpop.eup %1131  ;;  %vm596_vm3 = vweird.f32 %v1130_v29 }
 0x1fd   : > { %1133 = vrsqrt.f32 %v571_v37  ;;  %v346_v43 = vmul.f32 %v1132_v39, %v344_v27  ;;  %vm597_vm5 = vmor %vm595_vm4, %vm596_vm3  ;;  %vm352_vm6 = vweird.f32 %v1132_v39  ;;  %vm578_vm10 = vweird.f32 %v571_v37 }
 0x1fe   : > { %v591_v33 = vmul.f32 %v1130_v29, %v590_v31  ;;  %v698_v34 = vsel %vm697_vm2, %v1128_v21, %v694_v30  ;;  %vm353_vm8 = vmor %vm351_vm7, %vm352_vm6 }
 0x1ff   : > { %v716_v35 = vmul.f32 %v698_v34, %v1563_v4  ;;  %v347_v47 = vmul.f32 %v1132_v39, %v346_v43 }
 0x200   : > { %v592_v36 = vmul.f32 0.5, %v591_v33 }
 0x201   : > { %v723_v38 = vmul.f32 %v721_v17, %v716_v35  ;;  %v348_v52 = vmul.f32 0.5, %v347_v47 }
 0x202   : > { %v593_v40 = vsub.f32 1.5, %v592_v36 }
 0x203   : > { %v732_v41 = vpack.c.bf16 %v723_v38, %v723_v38  ;;  %v1134_v49 = vpop.eup %1133  ;;  %v349_v54 = vsub.f32 1.5, %v348_v52 }
 0x204   : > { %v594_v42 = vmul.f32 %v1130_v29, %v593_v40  ;;  %v573_v53 = vmul.f32 %v1134_v49, %v571_v37  ;;  %vm579_vm9 = vweird.f32 %v1134_v49 }
 0x205   : > { %735 = vrot.lane.b32.xlu0 %v732_v41, %s1384_s7  ;;  %v350_v56 = vmul.f32 %v1132_v39, %v349_v54  ;;  %vm580_vm11 = vmor %vm578_vm10, %vm579_vm9  ;;  %s972_s7 = sshll.u32 %s1546_s10, 3 }
 0x206   : > { %v598_v44 = vsel %vm597_vm5, %v1130_v29, %v594_v42  ;;  %v574_v55 = vmul.f32 %v1134_v49, %v573_v53  ;;  %s303_s28 = scalar_lea.vmem [#allocation12], %s972_s7 }
 0x207   : > { %v607_v46 = vmul.f32 %v598_v44, %v1563_v4  ;;  %v354_v59 = vsel %vm353_vm8, %v1132_v39, %v350_v56  ;;  %s846_s30 = sshll.u32 %s303_s28, 4  ;;  %s847_s30 = int_to_ptr.vmem [resolvable:$true] %s846_s30 }
 0x208   : > { %v575_v57 = vmul.f32 0.5, %v574_v55  ;;  %v373_v60 = vmul.f32 %v354_v59, %v1563_v4 }
 0x209   : > { %v614_v48 = vmul.f32 %v612_v45, %v607_v46 }
 0x20a   : > { %v576_v58 = vsub.f32 1.5, %v575_v57  ;;  %v376_v1 = vmul.f32 %v1118_v61, %v373_v60 }
 0x20b   : > { %v616_v50 = vpack.c.bf16 %v614_v48, %v614_v48 }
 0x20c   : > { %v577_v63 = vmul.f32 %v1134_v49, %v576_v58  ;;  %v385_v5 = vpack.c.bf16 %v376_v1, %v376_v1 }
 0x20d   : > { %621 = vrot.lane.b32.xlu2 %v616_v50, %s1387_s27  ;;  %535 = vrot.lane.b32.xlu0 %v1601_v51, %s1394_s9  ;;  %s844_s27 = scalar_lea.hbm %s1682_s5, %s1000_s26 }
 0x20e   : > { %v581_v2 = vsel %vm580_vm11, %v1134_v49, %v577_v63 }
 0x20f   : > { %v599_v3 = vmul.f32 %v581_v2, %v1563_v4 }
 0x21d   : > { %v389_v62 = vpop.permute.xlu2 %388 }
 0x21e   : > { %v394_v0 = vsel %vm340_vm1, %v389_v62, 0 }
 0x21f   : > { %403 = vmatpush.bf16.xpose.msra.mxu1 %v394_v0 }
 0x225   : > { %v604_v6 = vpop.permute.xlu2 %603 }
 0x226   : > { %v606_v7 = vmul.f32 %v604_v6, %v599_v3  ;;  %982 = vmatmul.msk.bf16.vlgmr.msra.gmra.mxu1 %vm340_vm1, %v385_v5 }
 0x228   : > { %v615_v8 = vpack.c.bf16 %v606_v7, %v606_v7 }
 0x22a   : > { %618 = vrot.lane.b32.xlu1 %v615_v8, %s1390_s6  ;;  %s848_s6 = sshll.u32 %s844_s27, 4  ;;  %s849_s6 = int_to_ptr.hbm [resolvable:$true] %s848_s6 }
 0x22d   : > { %v502_v11 = vpop.permute.xlu2 %501 }
 0x232   : > { %421 = vrot.lane.b32.xlu1 %v1601_v51, %s1397_s13 }
 0x23d   : > { %v505_v9 = vpop.permute.xlu1 %504 }
 0x23e   : > { %v510_v10 = vsel %vm340_vm1, %v505_v9, 0 }
 0x23f   : > { %519 = vmatpush.bf16.xpose.msra.mxu3 %v510_v10 }
 0x245   : > { %v739_v12 = vpop.permute.xlu1 %738 }
 0x246   : > { %984 = vmatmul.msk.bf16.vlgmr.msra.gmra.mxu3 %vm340_vm1, %v502_v11  ;;  %v744_v4 = vsel %vm340_vm1, %v739_v12, 0 }
 0x247   : > { %753 = vmatpush.bf16.xpose.msrb.mxu3 %v744_v4 }
 0x267   : > { %v622_v13 = vpop.permute.xlu2 %621 }
 0x268   : > { %v627_v14 = vsel %vm340_vm1, %v622_v13, 0 }
 0x269   : > { %636 = vmatpush.bf16.xpose.msrb.mxu0 %v627_v14 }
 0x277   : > { %v736_v15 = vpop.permute.xlu0 %735 }
 0x278   : > { %988 = vmatmul.msk.bf16.vlgmr.msrb.gmra.mxu3 %vm340_vm1, %v736_v15 }
 0x27f   : > { %v536_v17 = vpop.permute.xlu0 %535 }
 0x280   : > { %v541_v22 = vsel %vm426_vm12, %v536_v17, 0 }
 0x29c   : > { %v619_v16 = vpop.permute.xlu1 %618 }
 0x29d   : > { %986 = vmatmul.msk.bf16.vlgmr.msrb.gmra.mxu0 %vm340_vm1, %v619_v16 }
 0x2a3   : > { %v405_v18 = vpop.f32.mrf.mxu1 }
 0x2a4   : > { %v422_v19 = vpop.permute.xlu1 %421  ;;  %v409_v20 = vsel %vm340_vm1, %v405_v18, -inf }
 0x2a5   : > { %410 = vmax.xlane.f32.xlu2 %v409_v20  ;;  %v428_v21 = vsel %vm426_vm12, %v422_v19, 0 }
 0x2a6   : > { %437 = vmatpush.bf16.msra.mxu2 %v428_v21 }
 0x2aa   : > { %550 = vmatpush.bf16.msrb.mxu2 %v541_v22  ;;  %v1006_v22 = vld [vmem:[#allocation8 + $0x8] sm:$0xff] }
 0x2ab   : > { %v407_v23 = vpop.f32.mrf.mxu1  ;;  %825 = vmatpush.bf16.msra.mxu0 %v1006_v22 }
 0x2ac   : > { %v1005_v23 = vld [vmem:[#allocation8] sm:$0xff] }
 0x2af   : > { %826 = vmatpush.bf16.msra.mxu0 %v1005_v23 }
 0x2c9   : > { %v521_v24 = vpop.f32.mrf.mxu3 }
 0x2ca   : > { %v525_v25 = vsel %vm340_vm1, %v521_v24, -inf }
 0x2cb   : > { %526 = vmax.xlane.f32.xlu1 %v525_v25 }
 0x2d1   : > { %v523_v26 = vpop.f32.mrf.mxu3 }
 0x2e4   : > { %652 = vrot.lane.b32.xlu1 %v1601_v51, %s1395_s17  ;;  %s1321_s17 = scalar_lea.hbm %s1682_s5, 16 }
 0x2fb   : > { %v755_v27 = vpop.f32.mrf.mxu3 }
 0x2fc   : > { %v759_v28 = vsel %vm340_vm1, %v755_v27, -inf }
 0x2fd   : > { %760 = vmax.xlane.f32.xlu0 %v759_v28 }
 0x303   : > { %v757_v29 = vpop.f32.mrf.mxu3 }
 0x318   : > { %v411_v30 = vpop.xlane.xlu2 %410 }
 0x319   : > { %v412_v31 = vsub.f32 %v405_v18, %v411_v30 }
 0x31a   : > { %v638_v32 = vpop.f32.mrf.mxu0 }
 0x31b   : > { %v413_v33 = vmul.f32 1.442695, %v412_v31  ;;  %v642_v34 = vsel %vm340_vm1, %v638_v32, -inf }
 0x31c   : > { %643 = vmax.xlane.f32.xlu2 %v642_v34 }
 0x31d   : > { %1135 = vpow2.f32 %v413_v33 }
 0x322   : > { %v640_v35 = vpop.f32.mrf.mxu0 }
 0x323   : > { %v1136_v36 = vpop.eup %1135 }
 0x324   : > { %v418_v37 = vpack.c.bf16 %v1136_v36, %v1136_v36  ;;  %v415_v60 = vsel %vm340_vm1, %v1136_v36, 0.0 }
 0x326   : > { %983 = vmatmul.msk.bf16.vlgmr.msra.gmra.mxu2 %vm340_vm1, %v418_v37 }
 0x334   : > { %769 = vrot.lane.b32.xlu2 %v1601_v51, %s1392_s15  ;;  %s1315_s15 = sshra.s32 %s849_s6, 4  ;;  %s1316_s15 = int_to_ptr.hbm [resolvable:$true] %s1315_s15 }
 0x335   : > { %p1322_p12 = scmp.lt.s32.totalorder %s1316_s15, %s1682_s5 }
 0x33e   : > { %v527_v38 = vpop.xlane.xlu1 %526 }
 0x33f   : > { %v528_v39 = vsub.f32 %v521_v24, %v527_v38 }
 0x341   : > { %v529_v40 = vmul.f32 1.442695, %v528_v39 }
 0x343   : > { %1137 = vpow2.f32 %v529_v40 }
 0x349   : > { %v1138_v41 = vpop.eup %1137 }
 0x34a   : > { %v531_v42 = vsel %vm340_vm1, %v1138_v41, 0.0  ;;  %v534_v43 = vpack.c.bf16 %v1138_v41, %v1138_v41 }
 0x34b   : > { %532 = vadd.xlane.f32.xlu0 %v531_v42 }
 0x34c   : > { %985 = vmatmul.msk.bf16.vlgmr.msrb.gmra.mxu2 %vm340_vm1, %v534_v43 }
 0x356   : > { %v653_v44 = vpop.permute.xlu1 %652 }
 0x357   : > { %v658_v45 = vsel %vm426_vm12, %v653_v44, 0 }
 0x358   : > { %667 = vmatpush.bf16.msrb.mxu1 %v658_v45 }
 0x370   : > { %v761_v46 = vpop.xlane.xlu0 %760 }
 0x371   : > { %v762_v47 = vsub.f32 %v755_v27, %v761_v46 }
 0x373   : > { %v763_v48 = vmul.f32 1.442695, %v762_v47 }
 0x375   : > { %1139 = vpow2.f32 %v763_v48 }
 0x37b   : > { %v1140_v49 = vpop.eup %1139 }
 0x37c   : > { %v765_v50 = vsel %vm340_vm1, %v1140_v49, 0.0  ;;  %v768_v57 = vpack.c.bf16 %v1140_v49, %v1140_v49 }
 0x37d   : > { %766 = vadd.xlane.f32.xlu2 %v765_v50 }
 0x38f   : > { %v644_v51 = vpop.xlane.xlu2 %643 }
 0x390   : > { %v645_v52 = vsub.f32 %v638_v32, %v644_v51 }
 0x392   : > { %v646_v53 = vmul.f32 1.442695, %v645_v52 }
 0x394   : > { %1141 = vpow2.f32 %v646_v53 }
 0x397   : > { %v770_v54 = vpop.permute.xlu2 %769 }
 0x398   : > { %v775_v55 = vsel %vm426_vm12, %v770_v54, 0 }
 0x399   : > { %784 = vmatpush.bf16.msra.mxu2 %v775_v55 }
 0x39a   : > { %v1142_v56 = vpop.eup %1141 }
 0x39b   : > { %v648_v58 = vsel %vm340_vm1, %v1142_v56, 0.0  ;;  %v651_v59 = vpack.c.bf16 %v1142_v56, %v1142_v56 }
 0x39c   : > { %649 = vadd.xlane.f32.xlu0 %v648_v58  ;;  %989 = vmatmul.msk.bf16.vlgmr.msra.gmra.mxu2 %vm340_vm1, %v768_v57 }
 0x39d   : > { %987 = vmatmul.msk.bf16.vlgmr.msrb.gmra.mxu1 %vm340_vm1, %v651_v59  ;;  %vm446_vm1 = vcmask 60416  }
 0x3a4   : > { %416 = vadd.xlane.f32.xlu0 %v415_v60 }
 0x3a9   : > { %v439_v61 = vpop.f32.mrf.mxu2 }
 0x3b1   : > { %v441_v62 = vpop.f32.mrf.mxu2 }
 0x3be   : > { %v533_v63 = vpop.xlane.xlu0 %532 }
 0x3bf   : > { %1143 = vrcp.f32 %v533_v63 }
 0x3c5   : > { %v1144_v0 = vpop.eup %1143 }
 0x3cf   : > { %v552_v1 = vpop.f32.mrf.mxu2 }
 0x3d0   : > { %v557_v2 = vmul.f32 %v1144_v0, %v552_v1 }
 0x3d2   : > { %v558_v3 = vpack.c.bf16 %v557_v2, %v557_v2 }
 0x3d4   : > { %560 = vrot.lane.b32.xlu1 %v558_v3, %s1393_s16  ;;  %s1317_s16 = scalar_lea.hbm %s1316_s15, 8 }
 0x3d5   : > { %p1318_p1 = scmp.ne.s32.totalorder %s1316_s15, %s1317_s16  ;;  %p1323_p7 = scmp.lt.s32.totalorder %s1321_s17, %s1317_s16 }
 0x3d7   : > { %v554_v5 = vpop.f32.mrf.mxu2  ;;  %p1319_p3 = pnand %p1318_p1, %p1515_p4  ;;  %p1324_p8 = por %p1323_p7, %p1322_p12 }
 0x3d9   : > { %p1320_p5 = pneg %p1319_p3 }
 0x3db   : > { %p1325_p9 = pnand %p1324_p8, %p1320_p5 }
 0x3f0   : > { %v767_v7 = vpop.xlane.xlu2 %766 }
 0x40f   : > { %v650_v6 = vpop.xlane.xlu0 %649 }
 0x410   : > { %1145 = vrcp.f32 %v650_v6 }
 0x416   : > { %v1146_v9 = vpop.eup %1145 }
 0x417   : > { %v417_v8 = vpop.xlane.xlu0 %416 }
 0x418   : > { %1147 = vrcp.f32 %v417_v8 }
 0x419   : > { %1149 = vrcp.f32 %v767_v7 }
 0x41a   : > { %v669_v10 = vpop.f32.mrf.mxu1 }
 0x41b   : > { %v674_v11 = vmul.f32 %v1146_v9, %v669_v10 }
 0x41d   : > { %v675_v12 = vpack.c.bf16 %v674_v11, %v674_v11 }
 0x41e   : > { %v1148_v4 = vpop.eup %1147 }
 0x41f   : > { %v1150_v13 = vpop.eup %1149  ;;  %v444_v14 = vmul.f32 %v1148_v4, %v439_v61  ;;  %677 = vrot.lane.b32.xlu0 %v675_v12, %s1396_s22  ;;  %v786_v15 = vpop.f32.mrf.mxu2 }
 0x420   : > { %v791_v16 = vmul.f32 %v1150_v13, %v786_v15 }
 0x421   : > { %v445_v17 = vpack.c.bf16 %v444_v14, %v444_v14 }
 0x422   : > { %v792_v18 = vpack.c.bf16 %v791_v16, %v791_v16  ;;  %v671_v19 = vpop.f32.mrf.mxu1 }
 0x423   : > { %447 = vst.msk [vmem:[#allocation2] sm:$0xf] %vm446_vm1, %v445_v17 }
 0x424   : > { %794 = vrot.lane.b32.xlu1 %v792_v18, %s1391_s14  ;;  %s834_s14 = scalar_lea.sflag [#allocation5], %s1546_s10 }
 0x427   : > { %v788_v20 = vpop.f32.mrf.mxu2 }
 0x446   : > { %v561_v21 = vpop.permute.xlu1 %560 }
 0x447   : > { %564 = vst.msk [vmem:[#allocation2] sm:$0xf] %vm563_vm13, %v561_v21 }
 0x491   : > { %v678_v24 = vpop.permute.xlu0 %677 }
 0x492   : > { %681 = vst.msk [vmem:[#allocation2] sm:$0xf] %vm680_vm14, %v678_v24 }
 0x496   : > { %v795_v25 = vpop.permute.xlu1 %794 }
 0x497   : > { %798 = vst.msk [vmem:[#allocation2] sm:$0xf] %vm797_vm15, %v795_v25 }
 0x49e   : > { %v799_v26 = vld [vmem:[#allocation2] sm:$0xf] }
 0x49f   : > { %998 = vmatmul.msk.bf16.vlgmr.msra.gmra.mxu0 %vm322_vm0, %v799_v26 }
 0x51c   : > { %v828_v27 = vpop.f32.mrf.mxu0 }
 0x51d   : > { %832 = vst.msk [vmem:[%s303_s28] sm:$0xff] %vm322_vm0, %v828_v27 }
 0x51e   : > { %1328 = shalt.err (!%p1325_p9)
}
 0x51f   : > { %1025 = dma.vmem_to_hbm [thread:$0]  (%p1515_p4), %s847_s30, 128, %s849_s6, %s834_s14  }
 0x524   : > { %v830_v28 = vpop.f32.mrf.mxu0 }
 0x525 PF: > { %s860_s10 = sand.u32 1, %s1363_s18   ;;  %p1690_p10 = scmp.ge.s32.totalorder %s1375_s21, 2 }
 0x526   : > { %s861_s26 = scalar_lea.sflag [#allocation5], %s860_s10 }
 0x527   : > { %p1045_p13 = pnand %p1690_p10, %p1519_p6 }
 0x529   : > { %p1046_p11 = pneg %p1045_p13 }
 0x52b   : > { %1358 = dma.done.wait (%p1046_p11), %s861_s26, 128  }
 0x52c   : > { %1360 = vsyncadd (%p1046_p11), %s861_s26, 4294967168  ;;  %p20_p0 = scmp.ge.s32.totalorder %s1489_s29, 4   ;;  %s1691_s18 = smov %s1367_s19 }
 0x52d   : > { %s1692_s19 = smov %s1371_s20  ;;  %s1693_s20 = smov %s1500_s8 }
 0x52e   : > { %s1694_s21 = smov %s1489_s29  ;;  %22 = sbr.rel (!%p20_p0) target bundleno = 7 (0x7), region = 101 }
 0x533   :  { %867 = vsyncpa [#allocation4], 1 }
 0x534   :  { %869 = vsyncpa [#allocation4 + $0x1], 1 }
 0x535   :  { %870 = vsyncpa [#allocation7], 1 }
 0x536   :  { %871 = vsyncpa [#allocation10], 1 }
 0x537   :  { %872 = vsyncpa [#allocation5], 1 }
 0x538   :  { %874 = vsyncpa [#allocation5 + $0x1], 1 }

</bundles_post_ra>
